<compile_context>
chip_gen: v5e
topology: v5e:2x2
jax: 0.10.0
libtpu: 0.0.40
codegen_flags: <defaults>
</compile_context>

<pallas_src>
import functools

import numpy as np
import jax
import jax.numpy as jnp
from jax.experimental import pallas as pl
from jax.experimental.pallas import tpu as pltpu


# ----------------------------------------------------------------------------
# Host-side helpers (all static / NumPy -> constant-folded under jit)
# ----------------------------------------------------------------------------
def _interp_matrix_np(in_size: int, out_size: int) -> np.ndarray:
    """Dense 1-D bilinear interpolation matrix (out_size, in_size), align_corners=False.

    Matches PyTorch upsample_bilinear2d: src = (dst + 0.5) * (in/out) - 0.5, negative
    source coords clamped to 0, neighbour indices clamped to [0, in_size - 1].
    """
    dst = np.arange(out_size, dtype=np.float64)
    src = (dst + 0.5) * (in_size / out_size) - 0.5
    src = np.maximum(src, 0.0)
    i0 = np.minimum(np.floor(src).astype(np.int64), in_size - 1)
    i1 = np.minimum(i0 + 1, in_size - 1)
    lam = (src - i0).astype(np.float32)
    w = np.zeros((out_size, in_size), dtype=np.float32)
    rows = np.arange(out_size)
    np.add.at(w, (rows, i0), 1.0 - lam)
    np.add.at(w, (rows, i1), lam)
    return w


def _vmem_capacity_bytes() -> int:
    """Per-core VMEM capacity; conservative (v7x-sized) fallback if the query fails."""
    try:
        return int(pltpu.get_tpu_info().vmem_capacity_bytes)
    except Exception:
        return 64 * 1024 * 1024


def _tile_pad_bytes(rows: int, cols: int, itemsize: int) -> int:
    """VMEM bytes of one (rows, cols) 2-D slice after (sublane, 128) layout padding.

    The minimum sublane tile grows as the dtype narrows: 8 (f32), 16 (bf16), 32 (int8).
    """
    sub = 8 * max(1, 4 // itemsize)
    prow = -(-rows // sub) * sub
    pcol = -(-cols // 128) * 128
    return prow * pcol * itemsize


def _footprint_bytes(tb, H, W, Hout, Wout, itemsize, flat_layout) -> int:
    """Conservative per-grid-step VMEM footprint; every intermediate scales with TB."""
    if flat_layout:
        in_tile = _tile_pad_bytes(tb * H, W, itemsize)
        out_tile = _tile_pad_bytes(tb * Hout, Wout, itemsize)
    else:  # 3-D tiles -> per-image sublane padding
        in_tile = tb * _tile_pad_bytes(H, W, itemsize)
        out_tile = tb * _tile_pad_bytes(Hout, Wout, itemsize)
    io = 2 * (in_tile + out_tile)                       # double-buffered pipeline copies
    wts = 2 * (_tile_pad_bytes(H, Hout, 4) + _tile_pad_bytes(W, Wout, 4))
    inter = (                                           # f32 values live inside the body
        _tile_pad_bytes(tb * H, W, 4)                   #   x value
        + tb * _tile_pad_bytes(W, H, 4)                 #   x transposed
        + _tile_pad_bytes(tb * W, Hout, 4)              #   after height matmul
        + tb * _tile_pad_bytes(Hout, W, 4)              #   transposed back
        + _tile_pad_bytes(tb * Hout, Wout, 4)           #   after width matmul (pre-store)
    )
    return io + wts + inter


def _divisors_desc(n: int):
    small, large = [], []
    i = 1
    while i * i <= n:
        if n % i == 0:
            small.append(i)
            if i != n // i:
                large.append(n // i)
        i += 1
    return sorted(small + large, reverse=True)


def _choose_batch_tile(B, H, W, Hout, Wout, itemsize, budget_bytes, flat_layout) -> int:
    """Largest divisor of B that fits the VMEM budget and leaves >= 2 grid steps."""
    tb_cap = max(1, B // 2)          # >= 2 tiles -> both v7x TensorCores get work
    if not flat_layout:
        tb_cap = min(tb_cap, 16)     # safe path unrolls per-image matmuls
    for tb in _divisors_desc(B):
        if tb > tb_cap:
            continue
        if _footprint_bytes(tb, H, W, Hout, Wout, itemsize, flat_layout) <= budget_bytes:
            return tb
    return 1   # TODO(synk): spatially tile the image if a single (H, W) plane ever
               # exceeds the VMEM budget (not needed for typical decoder feature maps).


# ----------------------------------------------------------------------------
# Kernels
# ----------------------------------------------------------------------------
def _bilinear_kernel_flat(x_ref, wht_ref, wwt_ref, o_ref, *,
                          tb, h, w, hout, wout, bf16_ops):
    # x_ref:   (TB*H, W)        input slab
    # wht_ref: (H, Hout)        height interp matrix, pre-transposed (VMEM-resident)
    # wwt_ref: (W, Wout)        width interp matrix, pre-transposed (VMEM-resident)
    # o_ref:   (TB*Hout, Wout)  output slab (lane-dense store when Wout >= 128)
    wht = wht_ref[...]
    wwt = wwt_ref[...]

    # ---- height pass: XLU transpose + one flat MXU matmul (M = TB*W) ----------
    x3 = x_ref[...].reshape(tb, h, w)                       # leading-dim split (H % 8 == 0)
    xt = pltpu.einshape("bhw->bwh", x3).reshape(tb * w, h)  # (TB*W, H); merge free (W % 8 == 0)
    if bf16_ops:
        xt, wht, wwt = (xt.astype(jnp.bfloat16), wht.astype(jnp.bfloat16),
                        wwt.astype(jnp.bfloat16))
    u = jnp.dot(xt, wht, preferred_element_type=jnp.float32)          # (TB*W, Hout)

    # ---- width pass: XLU transpose + one flat MXU matmul (M = TB*Hout) --------
    u3 = u.reshape(tb, w, hout)
    ut = pltpu.einshape("bwo->bow", u3).reshape(tb * hout, w)         # (TB*Hout, W)
    if bf16_ops:
        ut = ut.astype(jnp.bfloat16)
    o = jnp.dot(ut, wwt, preferred_element_type=jnp.float32)          # (TB*Hout, Wout)

    o_ref[...] = o.astype(o_ref.dtype)


def _bilinear_kernel_perimage(x_ref, wht_ref, wwt_ref, o_ref, *, bf16_ops):
    # Safe path for H or W not multiples of 8 (avoids layout-crossing reshapes).
    # x_ref: (TB, H, W), o_ref: (TB, Hout, Wout); TB is kept small (<= 16).
    tb = x_ref.shape[0]
    wh = wht_ref[...].T          # (Hout, H) -- 2-D transpose, hoisted out of the loop
    wwt = wwt_ref[...]           # (W, Wout)
    if bf16_ops:
        wh, wwt = wh.astype(jnp.bfloat16), wwt.astype(jnp.bfloat16)
    for b in range(tb):          # static unroll; per-image 2-D MXU matmuls
        xb = x_ref[b]
        if bf16_ops:
            xb = xb.astype(jnp.bfloat16)
        t = jnp.dot(xb, wwt, preferred_element_type=jnp.float32)      # (H, Wout)
        if bf16_ops:
            t = t.astype(jnp.bfloat16)
        o = jnp.dot(wh, t, preferred_element_type=jnp.float32)        # (Hout, Wout)
        o_ref[b] = o.astype(o_ref.dtype)


# ----------------------------------------------------------------------------
# Wrapper
# ----------------------------------------------------------------------------
@functools.partial(jax.jit, static_argnames=("scale_factor", "use_bf16_operands"))
def bilinear_decoder(x: jax.Array, scale_factor: int,
                     use_bf16_operands: bool = False) -> jax.Array:
    """Equivalent of BilinearDecoder(scale_factor)(x) for NCHW input x.

    use_bf16_operands=True casts matmul operands to bf16 (f32 accumulation) -- the
    recommended setting on v5e if ~1e-3 relative error is acceptable; default keeps
    full f32 PyTorch numerics.
    """
    N, C, H, W = x.shape
    Hout, Wout = H * scale_factor, W * scale_factor
    B = N * C

    wht = jnp.asarray(_interp_matrix_np(H, Hout).T)     # (H, Hout)
    wwt = jnp.asarray(_interp_matrix_np(W, Wout).T)     # (W, Wout)

    flat_layout = (H % 8 == 0) and (W % 8 == 0)         # fast flat-matmul path
    itemsize = jnp.dtype(x.dtype).itemsize
    vmem_cap = _vmem_capacity_bytes()
    tile_budget = vmem_cap // 2                         # ~64 MiB on v5e/v6e, ~32 MiB on v7x
    vmem_limit = int((vmem_cap * 13) // 16)             # ~104 MiB / ~52 MiB

    TB = _choose_batch_tile(B, H, W, Hout, Wout, itemsize, tile_budget, flat_layout)
    n_steps = B // TB                                   # TB divides B -> no pad / slice

    if flat_layout:
        kernel = functools.partial(_bilinear_kernel_flat, tb=TB, h=H, w=W,
                                   hout=Hout, wout=Wout, bf16_ops=use_bf16_operands)
        x_in = x.reshape(B * H, W)                      # free reshape of contiguous NCHW
        in_spec_x = pl.BlockSpec((TB * H, W), lambda b: (b, 0))
        out_spec = pl.BlockSpec((TB * Hout, Wout), lambda b: (b, 0))
        out_shape = jax.ShapeDtypeStruct((B * Hout, Wout), x.dtype)
    else:
        kernel = functools.partial(_bilinear_kernel_perimage, bf16_ops=use_bf16_operands)
        x_in = x.reshape(B, H, W)
        in_spec_x = pl.BlockSpec((TB, H, W), lambda b: (b, 0, 0))
        out_spec = pl.BlockSpec((TB, Hout, Wout), lambda b: (b, 0, 0))
        out_shape = jax.ShapeDtypeStruct((B, Hout, Wout), x.dtype)

    out = pl.pallas_call(
        kernel,
        out_shape=out_shape,
        grid_spec=pltpu.PrefetchScalarGridSpec(
            num_scalar_prefetch=0,
            grid=(n_steps,),
            in_specs=[
                in_spec_x,
                # Constant index_maps -> interpolation matrices stay VMEM-resident.
                pl.BlockSpec((H, Hout), lambda b: (0, 0)),
                pl.BlockSpec((W, Wout), lambda b: (0, 0)),
            ],
            out_specs=out_spec,
        ),
        compiler_params=pltpu.CompilerParams(
            # Batch tiles are independent -> shards across both TensorCores on v7x.
            dimension_semantics=("parallel",),
            vmem_limit_bytes=vmem_limit,
        ),
    )(x_in, wht, wwt)

    return out.reshape(N, C, Hout, Wout)


def _jax_reference(x, scale_factor):
    # Pure-JAX reference using the same separable matrices (checks the Pallas plumbing;
    # the matrices themselves match PyTorch align_corners=False semantics).
    N, C, H, W = x.shape
    wh = jnp.asarray(_interp_matrix_np(H, H * scale_factor))
    ww = jnp.asarray(_interp_matrix_np(W, W * scale_factor))
    return jnp.einsum("oh,nchw,pw->ncop", wh, x, ww)


if __name__ == "__main__":
    key = jax.random.PRNGKey(0)

    # Main test: fast flat-matmul path (H, W multiples of 8).
    x = jax.random.normal(key, (2, 4, 16, 16), dtype=jnp.float32)
    y = jax.block_until_ready(bilinear_decoder(x, scale_factor=2))
    assert y.shape == (2, 4, 32, 32), y.shape
    y_ref = _jax_reference(x, 2)
    err = float(jnp.max(jnp.abs(y - y_ref)))
    assert err < 1e-4, err

    # Secondary test: non-multiple-of-8 spatial dims exercise the safe per-image path.
    x2 = jax.random.normal(jax.random.PRNGKey(0), (1, 3, 10, 12), dtype=jnp.float32)
    y2 = jax.block_until_ready(bilinear_decoder(x2, scale_factor=3))
    assert y2.shape == (1, 3, 30, 36), y2.shape
    y2_ref = _jax_reference(x2, 3)
    err2 = float(jnp.max(jnp.abs(y2 - y2_ref)))
    assert err2 < 1e-4, err2

    print("KERNEL_OK")
</pallas_src>

<mosaic_0001>
module attributes {stable_mosaic.version = 11 : i64} {
  func.func @_bilinear_kernel_flat(%arg0: i32, %arg1: memref<64x16xf32, #tpu.memory_space<vmem>>, %arg2: memref<16x32xf32, #tpu.memory_space<vmem>>, %arg3: memref<16x32xf32, #tpu.memory_space<vmem>>, %arg4: memref<128x32xf32, #tpu.memory_space<vmem>>) attributes {dimension_semantics = [#tpu.dimension_semantics<parallel>], iteration_bounds = array<i64: 2>, scalar_prefetch = 0 : i64, scratch_operands = 0 : i64, tpu.core_type = #tpu.core_type<tc>, window_params = [{transform_indices = @transform_0, window_bounds = array<i64: 64, 16>}, {pipeline_mode = #tpu.pipeline_mode<synchronous>, transform_indices = @transform_1, window_bounds = array<i64: 16, 32>}, {pipeline_mode = #tpu.pipeline_mode<synchronous>, transform_indices = @transform_2, window_bounds = array<i64: 16, 32>}, {transform_indices = @transform_3, window_bounds = array<i64: 128, 32>}]} {
    %c0 = arith.constant 0 : index
    %c0_0 = arith.constant 0 : index
    %0 = vector.load %arg2[%c0, %c0_0] : memref<16x32xf32, #tpu.memory_space<vmem>>, vector<16x32xf32>
    %c0_1 = arith.constant 0 : index
    %c0_2 = arith.constant 0 : index
    %1 = vector.load %arg3[%c0_1, %c0_2] : memref<16x32xf32, #tpu.memory_space<vmem>>, vector<16x32xf32>
    %c0_3 = arith.constant 0 : index
    %c0_4 = arith.constant 0 : index
    %2 = vector.load %arg1[%c0_3, %c0_4] : memref<64x16xf32, #tpu.memory_space<vmem>>, vector<64x16xf32>
    %3 = vector.shape_cast %2 : vector<64x16xf32> to vector<4x16x16xf32>
    %4 = tpu.transpose %3, [0, 2, 1] : vector<4x16x16xf32> -> vector<4x16x16xf32>
    %5 = vector.shape_cast %4 : vector<4x16x16xf32> to vector<64x16xf32>
    %cst = arith.constant dense<0.000000e+00> : vector<64x32xf32>
    %6 = tpu.matmul %5, %0, %cst {dimension_numbers = #tpu.dot_dimension_numbers<[1], [0], [0], [1], [0, 0, 1, 1], [], []>} : vector<64x16xf32>, vector<16x32xf32>, vector<64x32xf32> -> vector<64x32xf32>
    %7 = vector.shape_cast %6 : vector<64x32xf32> to vector<4x16x32xf32>
    %8 = tpu.transpose %7, [0, 2, 1] : vector<4x16x32xf32> -> vector<4x32x16xf32>
    %9 = vector.shape_cast %8 : vector<4x32x16xf32> to vector<128x16xf32>
    %cst_5 = arith.constant dense<0.000000e+00> : vector<128x32xf32>
    %10 = tpu.matmul %9, %1, %cst_5 {dimension_numbers = #tpu.dot_dimension_numbers<[1], [0], [0], [1], [0, 0, 1, 1], [], []>} : vector<128x16xf32>, vector<16x32xf32>, vector<128x32xf32> -> vector<128x32xf32>
    %c0_6 = arith.constant 0 : index
    %c0_7 = arith.constant 0 : index
    %11 = vector.load %arg4[%c0_6, %c0_7] : memref<128x32xf32, #tpu.memory_space<vmem>>, vector<128x32xf32>
    tpu.vector_store %arg4[%c0_6, %c0_7], %10 {strides = array<i32>} : memref<128x32xf32, #tpu.memory_space<vmem>>, vector<128x32xf32>,
    return
  }
  func.func @transform_0(%arg0: i32) -> (i32, i32) {
    %c0_i32 = arith.constant 0 : i32
    %c0_i32_0 = arith.constant 0 : i32
    return %arg0, %c0_i32 : i32, i32
  }
  func.func @transform_1(%arg0: i32) -> (i32, i32) {
    %c0_i32 = arith.constant 0 : i32
    %c0_i32_0 = arith.constant 0 : i32
    %c0_i32_1 = arith.constant 0 : i32
    return %c0_i32, %c0_i32_0 : i32, i32
  }
  func.func @transform_2(%arg0: i32) -> (i32, i32) {
    %c0_i32 = arith.constant 0 : i32
    %c0_i32_0 = arith.constant 0 : i32
    %c0_i32_1 = arith.constant 0 : i32
    return %c0_i32, %c0_i32_0 : i32, i32
  }
  func.func @transform_3(%arg0: i32) -> (i32, i32) {
    %c0_i32 = arith.constant 0 : i32
    %c0_i32_0 = arith.constant 0 : i32
    return %arg0, %c0_i32 : i32, i32
  }
}

</mosaic_0001>

<bundles_post_ra>
// kernel: bilinear_decoder.1
= control target key start
LH: loop header
LB: loop body
LE: loop exit
PB: predicated region body
PF: predicated region fallthrough
CT: control target
= control target key end

     0   :  { %8 = vsyncpa [#allocation3], 0  ;;  %s1318_s0 = inlined_call_operand.hbm [shape: f32[128,16], index: 0, kind: input, shape index: {}]   ;;  %s1319_s1 = inlined_call_operand.hbm [shape: f32[16,32], index: 1, kind: input, shape index: {}, may-alias: {1,2}]   ;;  %s1320_s2 = inlined_call_operand.hbm [shape: f32[16,32], index: 2, kind: input, shape index: {}, may-alias: {1,2}]   ;;  %s1321_s3 = inlined_call_operand.hbm [shape: f32[256,32], index: 3, kind: output, shape index: {}]  }
   0x1   :  { %10 = vsyncpa [#allocation3 + $0x1], 0 }
   0x2   :  { %11 = vsyncpa [#allocation6], 0 }
   0x3   :  { %12 = vsyncpa [#allocation4], 0 }
   0x4   :  { %14 = vsyncpa [#allocation4 + $0x1], 0  ;;  %s1108_s12 = smov 0   ;;  %s1110_s13 = smov 0  }
   0x5   :  { %s1112_s14 = smov 0   ;;  %s1114_s15 = smov 0  }
   0x6 LB: > { %s1129_s16 = sadd.s32 4294967295, %s1080_s15   ;;  %s798_s17 = sadd.s32 4294967294, %s1080_s15   ;;  %s1080_s15 = sphi %s1114_s15, %s1331_s15   ;;  %s1076_s14 = sphi %s1112_s14, %s1330_s14   ;;  %s1072_s13 = sphi %s1110_s13, %s1329_s13   ;;  %s1068_s12 = sphi %s1108_s12, %s1328_s12  }
   0x7   : > { %p40_p0 = scmp.ne.s32.totalorder %s1072_s13, %s1068_s12  ;;  %p41_p1 = scmp.eq.s32.totalorder %s1129_s16, 0 }
   0x8   : > { %p106_p2 = scmp.eq.s32.totalorder %s1129_s16, 1  ;;  %p112_p3 = scmp.eq.s32.totalorder %s798_s17, 1 }
   0x9   : > { %p1138_p4 = por %p41_p1, %p40_p0  ;;  %p799_p5 = scmp.ge.s32.totalorder %s1080_s15, 1 }
   0xa   : > { %p1143_p6 = por %p112_p3, %p40_p0  ;;  %p119_p7 = scmp.lt.s32.totalorder %s1080_s15, 3 }
   0xb   : > { %s130_s22 = sshll.u32 %s1319_s1, 4  ;;  %s1082_s24 = smov [#allocation5]   ;;  %s131_s22 = int_to_ptr.hbm [resolvable:$true] %s130_s22 }
   0xc   : > { %p1151_p8 = pnand %p799_p5, %p119_p7  ;;  %s132_s25 = sshll.u32 %s1082_s24, 4  ;;  %s133_s25 = int_to_ptr.vmem [resolvable:$true] %s132_s25 }
   0xd   : > { %s144_s28 = sshll.u32 %s1320_s2, 4  ;;  %s1083_s29 = smov 128   ;;  %s145_s28 = int_to_ptr.hbm [resolvable:$true] %s144_s28 }
   0xe   : > { %p860_p9 = pneg %p1151_p8  ;;  %s1084_s30 = smov 8  }
   0xf   : > { %s1085_s4 = smov [#allocation7]   ;;  %s1170_s6 = sadd.s32 1, %s1080_s15  }
  0x10   : > { %p861_p10 = pnand %p860_p9, %p41_p1  ;;  %s146_s5 = sshll.u32 %s1085_s4, 4  ;;  %s147_s5 = int_to_ptr.vmem [resolvable:$true] %s146_s5 }
  0x11   : > { %s27_s7 = sadd.s32 1, %s1076_s14  ;;  %s24_s8 = ssub.s32 %s1080_s15, %s1170_s6 }
  0x12   : > { %863 = dma.hbm_to_vmem [thread:$0]  (!%p861_p10), %s131_s22, 256, %s133_s25, [#allocation6], %s1083_s29, %s1083_s29, %s1084_s30  }
  0x13   : > { %866 = dma.hbm_to_vmem [thread:$0]  (!%p861_p10), %s145_s28, 256, %s147_s5, [#allocation6], %s1083_s29, %s1083_s29, %s1084_s30  }
  0x14   : > { %p34_p12 = scmp.ne.s32.totalorder %s1076_s14, %s1072_s13  ;;  %p25_p13 = scmp.eq.s32.totalorder %s24_s8, 0 }
  0x15   : > { %p35_p0 = scmp.eq.s32.totalorder %s1080_s15, 0  ;;  %p877_p5 = scmp.lt.s32.totalorder %s1080_s15, 2 }
  0x16   : > { %p1180_p3 = por %p106_p2, %p34_p12  ;;  %s160_s11 = sand.u32 1, %s1076_s14  }
  0x17   : > { %s1186_s10 = scalar_select %p25_p13, %s1076_s14, %s27_s7  }
  0x18   : > { %p36_p7 = por %p35_p0, %p34_p12  ;;  %s803_s17 = sshll.u32 %s160_s11, 6 }
  0x19   : > { %s840_s20 = sshll.u32 %s1080_s15, 6  ;;  %s164_s25 = scalar_lea.vmem [#allocation2], %s803_s17 }
  0x1a   : > { %s169_s24 = scalar_lea.hbm %s1318_s0, %s840_s20  ;;  %s172_s26 = sshll.u32 %s164_s25, 4  ;;  %s173_s26 = int_to_ptr.vmem [resolvable:$true] %s172_s26 }
  0x1b   : > { %s170_s27 = sshll.u32 %s169_s24, 4  ;;  %p1193_p2 = pnand %p877_p5, %p36_p7  ;;  %s171_s27 = int_to_ptr.hbm [resolvable:$true] %s170_s27 }
  0x1c   : > { %s161_s4 = scalar_lea.sflag [#allocation3], %s160_s11  ;;  %s980_s5 = sshra.s32 %s171_s27, 4  ;;  %s981_s5 = int_to_ptr.hbm [resolvable:$true] %s980_s5 }
  0x1d   : > { %s982_s7 = scalar_lea.hbm %s981_s5, 64  ;;  %p984_p10 = pneg %p1193_p2 }
  0x1e   : > { %p983_p9 = scmp.ne.s32.totalorder %s981_s5, %s982_s7  ;;  %s987_s20 = scalar_lea.hbm %s1318_s0, 128 }
  0x1f   : > { %p988_p0 = scmp.lt.s32.totalorder %s981_s5, %s1318_s0  ;;  %p989_p5 = scmp.lt.s32.totalorder %s987_s20, %s982_s7 }
  0x20   : > { %p985_p12 = pnand %p984_p10, %p983_p9 }
  0x21   : > { %p990_p7 = por %p989_p5, %p988_p0 }
  0x22   : > { %p986_p13 = pneg %p985_p12 }
  0x24   : > { %p991_p11 = pnand %p990_p7, %p986_p13 }
  0x26   : > { %994 = shalt.err (!%p991_p11)
}
  0x27   : > { %870 = dma.hbm_to_vmem [thread:$0]  (!%p1193_p2), %s171_s27, 1024, %s173_s26, %s161_s4, %s1083_s29, %s1083_s29, %s1084_s30  }
  0x28   : > { %184 = sbr.rel (%p1151_p8) target bundleno = 714 (0x2ca), region = 32  ;;  %s1213_s11 = sand.u32 (!%p1151_p8), 1, %s1072_s13  }
  0x29   : > { %s807_s24 = sshll.u32 (!%p1151_p8), %s1213_s11, 6  ;;  %s187_s25 = scalar_lea.sflag (!%p1151_p8), [#allocation3], %s1213_s11 }
  0x2a   : > { %s190_s5 = scalar_lea.vmem (!%p1151_p8), [#allocation2], %s807_s24 }
  0x2d   : > { %1055 = dma.done.wait (%p1138_p4), %s187_s25, 1024  }
  0x2e   : > { %1057 = vsyncadd (%p1138_p4), %s187_s25, 4294966272 }
  0x2f   : > { %1059 = dma.done.wait (%p41_p1), [#allocation6], 512  }
  0x30   : > { %1061 = vsyncadd (%p41_p1), [#allocation6], 4294966784  ;;  %v230_v0 = vld [vmem:[%s190_s5] sm:$0xff]  ;;  %v232_v1 = vld [vmem:[%s190_s5 + $0x10] sm:$0xff]  ;;  %vm366_vm0 = vcmask 130048   ;;  %s810_s18 = sshll.u32 %s1213_s11, 7 }
  0x31   : > { %238 = vxpose.xlu0.b32.start [1/2] (short) (narrow) %v230_v0, 16  ;;  %270 = vxpose.xlu1.b32.start [1/2] (short) (narrow) %v232_v1, 16  ;;  %v236_v2 = vld [vmem:[%s190_s5 + $0x30] sm:$0xff]  ;;  %v227_v3 = vld [vmem:[#allocation5 + $0x8] sm:$0xff]  ;;  %v233_v5 = vld [vmem:[%s190_s5 + $0x18] sm:$0xff]  ;;  %vm673_vm1 = vcmask 261120  }
  0x32   : > { %334 = vxpose.xlu2.b32.start [1/2] (short) (narrow) %v236_v2, 16  ;;  %405 = vmatpush.msra.mxu0 %v227_v3  ;;  %v231_v4 = vld [vmem:[%s190_s5 + $0x8] sm:$0xff]  ;;  %v237_v6 = vld [vmem:[%s190_s5 + $0x38] sm:$0xff]  ;;  %v234_v7 = vld [vmem:[%s190_s5 + $0x20] sm:$0xff]  ;;  %s1250_s23 = scalar_lea.vmem [#allocation8], %s810_s18  ;;  %s841_s29 = sshll.u32 %s1129_s16, 7 }
  0x33   : > { %842 = vmatpush.msra.mxu3 %v227_v3  ;;  %v235_v8 = vld [vmem:[%s190_s5 + $0x28] sm:$0xff]  ;;  %v226_v9 = vld [vmem:[#allocation5] sm:$0xff]  ;;  %v229_v22 = vld [vmem:[#allocation7 + $0x8] sm:$0xff]  ;;  %s702_s27 = scalar_lea.hbm %s1321_s3, %s841_s29  ;;  %s703_s28 = sshll.u32 %s1250_s23, 4  ;;  %s704_s28 = int_to_ptr.vmem [resolvable:$true] %s703_s28 }
  0x34   : > { %406 = vmatpush.msra.mxu0 %v226_v9  ;;  %v228_v23 = vld [vmem:[#allocation7] sm:$0xff]  ;;  %622 = vmatpush.msra.mxu1 %v229_v22  ;;  %s705_s4 = sshll.u32 %s702_s27, 4  ;;  %s691_s16 = scalar_lea.sflag [#allocation4], %s1213_s11  ;;  %s706_s4 = int_to_ptr.hbm [resolvable:$true] %s705_s4 }
  0x35   : > { %843 = vmatpush.msra.mxu3 %v226_v9  ;;  %844 = vmatpush.msra.mxu2 %v229_v22  ;;  %s1024_s7 = sshra.s32 %s706_s4, 4  ;;  %s1030_s21 = scalar_lea.hbm %s1321_s3, 256  ;;  %s1025_s7 = int_to_ptr.hbm [resolvable:$true] %s1024_s7 }
  0x36   : > { %623 = vmatpush.msra.mxu1 %v228_v23  ;;  %s1026_s8 = scalar_lea.hbm %s1025_s7, 128  ;;  %p1031_p11 = scmp.lt.s32.totalorder %s1025_s7, %s1321_s3 }
  0x37   : > { %845 = vmatpush.msrb.mxu3 %v229_v22  ;;  %846 = vmatpush.msra.mxu2 %v228_v23  ;;  %p1027_p1 = scmp.ne.s32.totalorder %s1025_s7, %s1026_s8  ;;  %p1032_p2 = scmp.lt.s32.totalorder %s1030_s21, %s1026_s8 }
  0x39   : > { %239 = vxpose.xlu0.b32.end [2/2] (short) (narrow) %v231_v4, 16  ;;  %271 = vxpose.xlu1.b32.end [2/2] (short) (narrow) %v233_v5, 16  ;;  %p1028_p4 = pnand %p1027_p1, %p1180_p3  ;;  %p1033_p9 = por %p1032_p2, %p1031_p11 }
  0x3a   : > { %335 = vxpose.xlu2.b32.end [2/2] (short) (narrow) %v237_v6, 16  ;;  %847 = vmatpush.msrb.mxu3 %v228_v23 }
  0x3b   : > { %p1029_p8 = pneg %p1028_p4 }
  0x3d   : > { %p1034_p10 = pnand %p1033_p9, %p1029_p8 }
  0x41   : > { %302 = vxpose.xlu0.b32.start [1/2] (short) (narrow) %v234_v7, 16 }
  0x49   : > { %303 = vxpose.xlu0.b32.end [2/2] (short) (narrow) %v235_v8, 16 }
  0xcb   : > { %v350_v10 = vpop.trf.xlu2 }
  0xcc   : > { %817 = vmatmul.msk.f32.vlgmr.msra.gmra.mxu3 %vm366_vm0, %v350_v10 }
  0xd3   : > { %v351_v12 = vpop.trf.xlu2 }
  0xd4   : > { %818 = vmatmul.msk.f32.gmra.mxu3 %vm366_vm0, %v351_v12 }
  0xd5   : > { %v254_v11 = vpop.trf.xlu0  ;;  %v286_v14 = vpop.trf.xlu1 }
  0xd6   : > { %811 = vmatmul.msk.f32.vlgmr.msra.gmra.mxu0 %vm366_vm0, %v254_v11 }
  0xdd   : > { %v255_v13 = vpop.trf.xlu0  ;;  %v287_v15 = vpop.trf.xlu1 }
  0xde   : > { %812 = vmatmul.msk.f32.gmra.mxu0 %vm366_vm0, %v255_v13 }
  0xe5   : > { %v318_v16 = vpop.trf.xlu0 }
  0xe6   : > { %813 = vmatmul.msk.f32.gmra.mxu0 %vm366_vm0, %v286_v14 }
  0xed   : > { %v319_v17 = vpop.trf.xlu0 }
  0xee   : > { %814 = vmatmul.msk.f32.gmra.mxu0 %vm366_vm0, %v287_v15 }
  0xf6   : > { %815 = vmatmul.msk.f32.gmra.mxu0 %vm366_vm0, %v318_v16 }
  0xfe   : > { %816 = vmatmul.msk.f32.gmra.mxu0 %vm366_vm0, %v319_v17 }
 0x14f   : > { %v426_v26 = vpop.f32.mrf.mxu3 }
 0x153   : > { %v408_v18 = vpop.f32.mrf.mxu0 }
 0x154   : > { %432 = vxpose.xlu2.b32.start [1/2] (short) (narrow) %v408_v18, 32 }
 0x157   : > { %v429_v27 = vpop.f32.mrf.mxu3 }
 0x15b   : > { %v411_v19 = vpop.f32.mrf.mxu0 }
 0x15c   : > { %433 = vxpose.xlu2.b32.end [2/2] (short) (narrow) %v411_v19, 32 }
 0x163   : > { %v414_v20 = vpop.f32.mrf.mxu0 }
 0x164   : > { %464 = vxpose.xlu1.b32.start [1/2] (short) (narrow) %v414_v20, 32 }
 0x16b   : > { %v417_v21 = vpop.f32.mrf.mxu0 }
 0x16c   : > { %465 = vxpose.xlu1.b32.end [2/2] (short) (narrow) %v417_v21, 32 }
 0x173   : > { %v420_v24 = vpop.f32.mrf.mxu0 }
 0x174   : > { %496 = vxpose.xlu0.b32.start [1/2] (short) (narrow) %v420_v24, 32 }
 0x17b   : > { %v423_v25 = vpop.f32.mrf.mxu0 }
 0x17c   : > { %497 = vxpose.xlu0.b32.end [2/2] (short) (narrow) %v423_v25, 32 }
 0x184   : > { %528 = vxpose.xlu1.b32.start [1/2] (short) (narrow) %v426_v26, 32 }
 0x18c   : > { %529 = vxpose.xlu1.b32.end [2/2] (short) (narrow) %v429_v27, 32 }
 0x1ed   : > { %v448_v28 = vpop.trf.xlu2 }
 0x1ee   : > { %819 = vmatmul.msk.f32.vlgmr.msra.gmra.mxu1 %vm366_vm0, %v448_v28 }
 0x1f5   : > { %v449_v29 = vpop.trf.xlu2 }
 0x1f6   : > { %820 = vmatmul.msk.f32.gmra.mxu1 %vm366_vm0, %v449_v29 }
 0x1fd   : > { %v450_v30 = vpop.trf.xlu2 }
 0x1fe   : > { %821 = vmatmul.msk.f32.gmra.mxu1 %vm366_vm0, %v450_v30 }
 0x205   : > { %v451_v31 = vpop.trf.xlu2 }
 0x206   : > { %822 = vmatmul.msk.f32.gmra.mxu1 %vm366_vm0, %v451_v31 }
 0x208   : > { %v480_v32 = vpop.trf.xlu1 }
 0x20e   : > { %823 = vmatmul.msk.f32.gmra.mxu1 %vm366_vm0, %v480_v32 }
 0x210   : > { %v481_v33 = vpop.trf.xlu1 }
 0x216   : > { %824 = vmatmul.msk.f32.gmra.mxu1 %vm366_vm0, %v481_v33 }
 0x218   : > { %v482_v34 = vpop.trf.xlu1  ;;  %v512_v36 = vpop.trf.xlu0 }
 0x219   : > { %825 = vmatmul.msk.f32.vlgmr.msra.gmra.mxu2 %vm366_vm0, %v482_v34 }
 0x220   : > { %v483_v35 = vpop.trf.xlu1  ;;  %v513_v38 = vpop.trf.xlu0 }
 0x221   : > { %826 = vmatmul.msk.f32.gmra.mxu2 %vm366_vm0, %v483_v35 }
 0x228   : > { %v544_v37 = vpop.trf.xlu1  ;;  %v514_v40 = vpop.trf.xlu0 }
 0x229   : > { %827 = vmatmul.msk.f32.gmra.mxu2 %vm366_vm0, %v512_v36  ;;  %831 = vmatmul.msk.f32.vlgmr.msrb.gmra.mxu3 %vm366_vm0, %v544_v37 }
 0x230   : > { %v545_v39 = vpop.trf.xlu1  ;;  %v515_v42 = vpop.trf.xlu0 }
 0x231   : > { %828 = vmatmul.msk.f32.gmra.mxu2 %vm366_vm0, %v513_v38  ;;  %832 = vmatmul.msk.f32.gmra.mxu3 %vm366_vm0, %v545_v39 }
 0x238   : > { %v546_v41 = vpop.trf.xlu1 }
 0x239   : > { %829 = vmatmul.msk.f32.gmra.mxu2 %vm366_vm0, %v514_v40  ;;  %833 = vmatmul.msk.f32.gmra.mxu3 %vm366_vm0, %v546_v41 }
 0x240   : > { %v547_v43 = vpop.trf.xlu1 }
 0x241   : > { %830 = vmatmul.msk.f32.gmra.mxu2 %vm366_vm0, %v515_v42  ;;  %834 = vmatmul.msk.f32.gmra.mxu3 %vm366_vm0, %v547_v43 }
 0x26b   : > { %v625_v44 = vpop.f32.mrf.mxu1 }
 0x26c   : > { %674 = vst.msk [vmem:[%s1250_s23] sm:$0xff] %vm673_vm1, %v625_v44 }
 0x273   : > { %v628_v45 = vpop.f32.mrf.mxu1 }
 0x274   : > { %675 = vst.msk [vmem:[%s1250_s23 + $0x8] sm:$0xff] %vm673_vm1, %v628_v45 }
 0x27b   : > { %v631_v46 = vpop.f32.mrf.mxu1 }
 0x27c   : > { %676 = vst.msk [vmem:[%s1250_s23 + $0x10] sm:$0xff] %vm673_vm1, %v631_v46 }
 0x283   : > { %v634_v47 = vpop.f32.mrf.mxu1 }
 0x284   : > { %677 = vst.msk [vmem:[%s1250_s23 + $0x18] sm:$0xff] %vm673_vm1, %v634_v47 }
 0x28b   : > { %v637_v48 = vpop.f32.mrf.mxu1 }
 0x28c   : > { %678 = vst.msk [vmem:[%s1250_s23 + $0x20] sm:$0xff] %vm673_vm1, %v637_v48 }
 0x293   : > { %v640_v49 = vpop.f32.mrf.mxu1 }
 0x294   : > { %679 = vst.msk [vmem:[%s1250_s23 + $0x28] sm:$0xff] %vm673_vm1, %v640_v49 }
 0x29c   : > { %v643_v50 = vpop.f32.mrf.mxu2 }
 0x29d   : > { %680 = vst.msk [vmem:[%s1250_s23 + $0x30] sm:$0xff] %vm673_vm1, %v643_v50 }
 0x2a4   : > { %v646_v51 = vpop.f32.mrf.mxu2 }
 0x2a5   : > { %681 = vst.msk [vmem:[%s1250_s23 + $0x38] sm:$0xff] %vm673_vm1, %v646_v51 }
 0x2ac   : > { %v649_v52 = vpop.f32.mrf.mxu2  ;;  %v661_v53 = vpop.f32.mrf.mxu3 }
 0x2ad   : > { %682 = vst.msk [vmem:[%s1250_s23 + $0x40] sm:$0xff] %vm673_vm1, %v649_v52 }
 0x2ae   : > { %686 = vst.msk [vmem:[%s1250_s23 + $0x60] sm:$0xff] %vm673_vm1, %v661_v53 }
 0x2b4   : > { %v652_v54 = vpop.f32.mrf.mxu2  ;;  %v664_v55 = vpop.f32.mrf.mxu3 }
 0x2b5   : > { %683 = vst.msk [vmem:[%s1250_s23 + $0x48] sm:$0xff] %vm673_vm1, %v652_v54 }
 0x2b6   : > { %687 = vst.msk [vmem:[%s1250_s23 + $0x68] sm:$0xff] %vm673_vm1, %v664_v55 }
 0x2bc   : > { %v655_v56 = vpop.f32.mrf.mxu2  ;;  %v667_v57 = vpop.f32.mrf.mxu3 }
 0x2bd   : > { %684 = vst.msk [vmem:[%s1250_s23 + $0x50] sm:$0xff] %vm673_vm1, %v655_v56 }
 0x2be   : > { %688 = vst.msk [vmem:[%s1250_s23 + $0x70] sm:$0xff] %vm673_vm1, %v667_v57 }
 0x2c4   : > { %v658_v58 = vpop.f32.mrf.mxu2  ;;  %v670_v59 = vpop.f32.mrf.mxu3 }
 0x2c5   : > { %685 = vst.msk [vmem:[%s1250_s23 + $0x58] sm:$0xff] %vm673_vm1, %v658_v58 }
 0x2c6   : > { %689 = vst.msk [vmem:[%s1250_s23 + $0x78] sm:$0xff] %vm673_vm1, %v670_v59 }
 0x2c7   : > { %1037 = shalt.err (!%p1034_p10)
}
 0x2c8   : > { %s1086_s11 = smov 128   ;;  %s1087_s25 = smov 8  }
 0x2c9   : > { %858 = dma.vmem_to_hbm [thread:$0]  (%p1180_p3), %s704_s28, 2048, %s706_s4, %s691_s16, %s1086_s11, %s1086_s11, %s1087_s25  }
 0x2ca PF: > { %s720_s5 = sand.u32 1, %s1068_s12   ;;  %p1327_p12 = scmp.ge.s32.totalorder %s1080_s15, 2 }
 0x2cb   : > { %s721_s18 = scalar_lea.sflag [#allocation4], %s720_s5 }
 0x2cc   : > { %p872_p13 = pnand %p1327_p12, %p1143_p6 }
 0x2ce   : > { %p873_p0 = pneg %p872_p13 }
 0x2d0   : > { %1063 = dma.done.wait (%p873_p0), %s721_s18, 2048  }
 0x2d1   : > { %1065 = vsyncadd (%p873_p0), %s721_s18, 4294965248  ;;  %p17_p5 = scmp.ge.s32.totalorder %s1170_s6, 4   ;;  %s1328_s12 = smov %s1072_s13 }
 0x2d2   : > { %s1329_s13 = smov %s1076_s14  ;;  %s1330_s14 = smov %s1186_s10 }
 0x2d3   : > { %s1331_s15 = smov %s1170_s6  ;;  %19 = sbr.rel (!%p17_p5) target bundleno = 6 (0x6), region = 85 }
 0x2d8   :  { %727 = vsyncpa [#allocation3], 1 }
 0x2d9   :  { %729 = vsyncpa [#allocation3 + $0x1], 1 }
 0x2da   :  { %730 = vsyncpa [#allocation6], 1 }
 0x2db   :  { %731 = vsyncpa [#allocation4], 1 }
 0x2dc   :  { %733 = vsyncpa [#allocation4 + $0x1], 1 }

</bundles_post_ra>
